<compile_context>
chip_gen: v6e
topology: v6e:2x2x1
jax: 0.10.0
libtpu: 0.0.40
codegen_flags: <defaults>
</compile_context>

<pallas_src>
import functools

import jax
import jax.numpy as jnp
from jax.experimental import pallas as pl
from jax.experimental.pallas import tpu as pltpu

LN_EPS = 1e-5  # PyTorch nn.LayerNorm default


def _layernorm_relu(h, gamma, beta):
    """Biased-variance LayerNorm (PyTorch semantics) + ReLU, all in f32."""
    mu = jnp.mean(h, axis=-1, keepdims=True)
    c = h - mu
    var = jnp.mean(c * c, axis=-1, keepdims=True)
    h = c * jax.lax.rsqrt(var + LN_EPS)
    return jnp.maximum(h * gamma + beta, 0.0)


def _critic_kernel(s_ref, a_ref,
                   w1s_ref, w1a_ref, b1_ref, g1_ref, be1_ref,
                   w2_ref, b2_ref, g2_ref, be2_ref,
                   w3_ref, b3_ref,
                   out_ref, *, compute_dtype):
    cd = compute_dtype

    # --- Linear 1 (concat fused: x @ W1 == s @ W1_s + a @ W1_a) ----------
    h = (jnp.dot(s_ref[...].astype(cd), w1s_ref[...].astype(cd),
                 preferred_element_type=jnp.float32)
         + jnp.dot(a_ref[...].astype(cd), w1a_ref[...].astype(cd),
                   preferred_element_type=jnp.float32)
         + b1_ref[...])
    h = _layernorm_relu(h, g1_ref[...], be1_ref[...])           # f32 (TB, fc1)

    # --- Linear 2 + LayerNorm + ReLU --------------------------------------
    h = (jnp.dot(h.astype(cd), w2_ref[...].astype(cd),
                 preferred_element_type=jnp.float32) + b2_ref[...])
    h = _layernorm_relu(h, g2_ref[...], be2_ref[...])           # f32 (TB, fc2)

    # --- Q head: (1, fc2) . (TB, fc2)^T -> (1, TB), lane-dense output -----
    q = jax.lax.dot_general(
        w3_ref[...].astype(cd), h.astype(cd),
        dimension_numbers=(((1,), (1,)), ((), ())),
        preferred_element_type=jnp.float32)                     # (1, TB)
    out_ref[...] = q + b3_ref[...]


def critic_forward(state, action, params, *, block_batch=512,
                   compute_dtype=jnp.float32):
    """state: (B, state_dim), action: (B, action_dim) -> Q-values (B, 1)."""
    state = state.astype(jnp.float32)
    action = action.astype(jnp.float32)
    B, S = state.shape
    A = action.shape[1]
    fc1 = params["w1"].shape[1]
    fc2 = params["w2"].shape[1]

    # Split W1 so the concat happens inside the kernel (two dots, one acc).
    w1s = params["w1"][:S]                 # (S, fc1)
    w1a = params["w1"][S:]                 # (A, fc1)
    w3_row = params["w3"].T                # (1, fc2): Q head as a row vector

    # Batch tiling: >=512-row tiles stream through the Pallas pipeline; a
    # small batch runs as a single full-array block.
    if B > block_batch:
        tb = block_batch
        bp = pl.cdiv(B, tb) * tb
        if bp != B:
            pad = bp - B
            state = jnp.pad(state, ((0, pad), (0, 0)))
            action = jnp.pad(action, ((0, pad), (0, 0)))
    else:
        tb, bp = B, B
    grid = (bp // tb,)

    stream = lambda i: (i, 0)              # activations: new batch tile / step
    resident = lambda i: (0, 0)            # params: stay VMEM-resident

    in_specs = [
        pl.BlockSpec((tb, S), stream),
        pl.BlockSpec((tb, A), stream),
        pl.BlockSpec((S, fc1), resident),
        pl.BlockSpec((A, fc1), resident),
        pl.BlockSpec((1, fc1), resident),   # b1
        pl.BlockSpec((1, fc1), resident),   # gamma1
        pl.BlockSpec((1, fc1), resident),   # beta1
        pl.BlockSpec((fc1, fc2), resident),
        pl.BlockSpec((1, fc2), resident),   # b2
        pl.BlockSpec((1, fc2), resident),   # gamma2
        pl.BlockSpec((1, fc2), resident),   # beta2
        pl.BlockSpec((1, fc2), resident),   # w3 (row)
        pl.BlockSpec((1, 1), resident),     # b3
    ]
    out_specs = pl.BlockSpec((1, tb), lambda i: (0, i))

    q_row = pl.pallas_call(
        functools.partial(_critic_kernel, compute_dtype=compute_dtype),
        out_shape=jax.ShapeDtypeStruct((1, bp), jnp.float32),
        grid=grid,
        in_specs=in_specs,
        out_specs=out_specs,
        compiler_params=pltpu.CompilerParams(
            dimension_semantics=("parallel",)),
    )(state, action,
      w1s, w1a, params["b1"], params["g1"], params["be1"],
      params["w2"], params["b2"], params["g2"], params["be2"],
      w3_row, params["b3"])

    # Lane-dense (1, Bp) -> (B, 1): layout plumbing outside the kernel.
    return q_row.T[:B]


def init_params(key, state_dim, action_dim, fc1_dim, fc2_dim):
    """Deterministic init mimicking PyTorch Linear defaults (U[-1/sqrt(fan_in), ...])."""
    def linear(key, fan_in, fan_out):
        kw, kb = jax.random.split(key)
        bound = 1.0 / jnp.sqrt(float(fan_in))
        w = jax.random.uniform(kw, (fan_in, fan_out), jnp.float32, -bound, bound)
        b = jax.random.uniform(kb, (1, fan_out), jnp.float32, -bound, bound)
        return w, b

    k1, k2, k3 = jax.random.split(key, 3)
    w1, b1 = linear(k1, state_dim + action_dim, fc1_dim)
    w2, b2 = linear(k2, fc1_dim, fc2_dim)
    w3, b3 = linear(k3, fc2_dim, 1)
    return dict(
        w1=w1, b1=b1,
        g1=jnp.ones((1, fc1_dim), jnp.float32), be1=jnp.zeros((1, fc1_dim), jnp.float32),
        w2=w2, b2=b2,
        g2=jnp.ones((1, fc2_dim), jnp.float32), be2=jnp.zeros((1, fc2_dim), jnp.float32),
        w3=w3, b3=b3,
    )


def _reference(state, action, p):
    """Pure-JAX reference for correctness check."""
    x = jnp.concatenate([state, action], axis=-1)

    def ln(h, g, be):
        mu = jnp.mean(h, axis=-1, keepdims=True)
        var = jnp.mean((h - mu) ** 2, axis=-1, keepdims=True)
        return (h - mu) / jnp.sqrt(var + LN_EPS) * g + be

    h1 = jax.nn.relu(ln(x @ p["w1"] + p["b1"], p["g1"], p["be1"]))
    h2 = jax.nn.relu(ln(h1 @ p["w2"] + p["b2"], p["g2"], p["be2"]))
    return h2 @ p["w3"] + p["b3"]


if __name__ == "__main__":
    # Small, DDPG-plausible shapes implied by the module's __init__.
    batch = 8
    state_dim = 12
    action_dim = 4
    fc1_dim = 64
    fc2_dim = 32

    key = jax.random.PRNGKey(0)
    kp, ks, ka = jax.random.split(key, 3)

    params = init_params(kp, state_dim, action_dim, fc1_dim, fc2_dim)
    state = jax.random.normal(ks, (batch, state_dim), jnp.float32)
    action = jax.random.normal(ka, (batch, action_dim), jnp.float32)

    q_ref = _reference(state, action, params)

    # f32 path: tight check against the pure-JAX reference.
    q = jax.block_until_ready(critic_forward(state, action, params))
    assert q.shape == (batch, 1), q.shape
    assert jnp.allclose(q, q_ref, atol=1e-4, rtol=1e-4), (q, q_ref)

    # bf16-MXU-operand path (LayerNorm stats + accumulation stay f32).
    q_bf16 = jax.block_until_ready(
        critic_forward(state, action, params, compute_dtype=jnp.bfloat16))
    assert q_bf16.shape == (batch, 1), q_bf16.shape
    assert jnp.allclose(q_bf16, q_ref, atol=1.5e-1, rtol=1.5e-1), (q_bf16, q_ref)

    print("KERNEL_OK")
</pallas_src>

<mosaic_0001>
module attributes {stable_mosaic.version = 11 : i64} {
  func.func @_critic_kernel(%arg0: i32, %arg1: memref<8x12xf32, #tpu.memory_space<vmem>>, %arg2: memref<8x4xf32, #tpu.memory_space<vmem>>, %arg3: memref<12x64xf32, #tpu.memory_space<vmem>>, %arg4: memref<4x64xf32, #tpu.memory_space<vmem>>, %arg5: memref<1x64xf32, #tpu.memory_space<vmem>>, %arg6: memref<1x64xf32, #tpu.memory_space<vmem>>, %arg7: memref<1x64xf32, #tpu.memory_space<vmem>>, %arg8: memref<64x32xf32, #tpu.memory_space<vmem>>, %arg9: memref<1x32xf32, #tpu.memory_space<vmem>>, %arg10: memref<1x32xf32, #tpu.memory_space<vmem>>, %arg11: memref<1x32xf32, #tpu.memory_space<vmem>>, %arg12: memref<1x32xf32, #tpu.memory_space<vmem>>, %arg13: memref<1x1xf32, #tpu.memory_space<vmem>>, %arg14: memref<1x8xf32, #tpu.memory_space<vmem>>) attributes {dimension_semantics = [#tpu.dimension_semantics<parallel>], iteration_bounds = array<i64: 1>, scalar_prefetch = 0 : i64, scratch_operands = 0 : i64, tpu.core_type = #tpu.core_type<tc>, window_params = [{transform_indices = @transform_0, window_bounds = array<i64: 8, 12>}, {transform_indices = @transform_1, window_bounds = array<i64: 8, 4>}, {pipeline_mode = #tpu.pipeline_mode<synchronous>, transform_indices = @transform_2, window_bounds = array<i64: 12, 64>}, {pipeline_mode = #tpu.pipeline_mode<synchronous>, transform_indices = @transform_3, window_bounds = array<i64: 4, 64>}, {pipeline_mode = #tpu.pipeline_mode<synchronous>, transform_indices = @transform_4, window_bounds = array<i64: 1, 64>}, {pipeline_mode = #tpu.pipeline_mode<synchronous>, transform_indices = @transform_5, window_bounds = array<i64: 1, 64>}, {pipeline_mode = #tpu.pipeline_mode<synchronous>, transform_indices = @transform_6, window_bounds = array<i64: 1, 64>}, {pipeline_mode = #tpu.pipeline_mode<synchronous>, transform_indices = @transform_7, window_bounds = array<i64: 64, 32>}, {pipeline_mode = #tpu.pipeline_mode<synchronous>, transform_indices = @transform_8, window_bounds = array<i64: 1, 32>}, {pipeline_mode = #tpu.pipeline_mode<synchronous>, transform_indices = @transform_9, window_bounds = array<i64: 1, 32>}, {pipeline_mode = #tpu.pipeline_mode<synchronous>, transform_indices = @transform_10, window_bounds = array<i64: 1, 32>}, {pipeline_mode = #tpu.pipeline_mode<synchronous>, transform_indices = @transform_11, window_bounds = array<i64: 1, 32>}, {pipeline_mode = #tpu.pipeline_mode<synchronous>, transform_indices = @transform_12, window_bounds = array<i64: 1, 1>}, {transform_indices = @transform_13, window_bounds = array<i64: 1, 8>}]} {
    %c0 = arith.constant 0 : index
    %c0_0 = arith.constant 0 : index
    %0 = vector.load %arg1[%c0, %c0_0] : memref<8x12xf32, #tpu.memory_space<vmem>>, vector<8x12xf32>
    %c0_1 = arith.constant 0 : index
    %c0_2 = arith.constant 0 : index
    %1 = vector.load %arg3[%c0_1, %c0_2] : memref<12x64xf32, #tpu.memory_space<vmem>>, vector<12x64xf32>
    %cst = arith.constant dense<0.000000e+00> : vector<8x64xf32>
    %2 = tpu.matmul %0, %1, %cst {dimension_numbers = #tpu.dot_dimension_numbers<[1], [0], [0], [1], [0, 0, 1, 1], [], []>} : vector<8x12xf32>, vector<12x64xf32>, vector<8x64xf32> -> vector<8x64xf32>
    %c0_3 = arith.constant 0 : index
    %c0_4 = arith.constant 0 : index
    %3 = vector.load %arg2[%c0_3, %c0_4] : memref<8x4xf32, #tpu.memory_space<vmem>>, vector<8x4xf32>
    %c0_5 = arith.constant 0 : index
    %c0_6 = arith.constant 0 : index
    %4 = vector.load %arg4[%c0_5, %c0_6] : memref<4x64xf32, #tpu.memory_space<vmem>>, vector<4x64xf32>
    %cst_7 = arith.constant dense<0.000000e+00> : vector<8x64xf32>
    %5 = tpu.matmul %3, %4, %cst_7 {dimension_numbers = #tpu.dot_dimension_numbers<[1], [0], [0], [1], [0, 0, 1, 1], [], []>} : vector<8x4xf32>, vector<4x64xf32>, vector<8x64xf32> -> vector<8x64xf32>
    %6 = arith.addf %2, %5 : vector<8x64xf32>
    %c0_8 = arith.constant 0 : index
    %c0_9 = arith.constant 0 : index
    %7 = vector.load %arg5[%c0_8, %c0_9] : memref<1x64xf32, #tpu.memory_space<vmem>>, vector<1x64xf32>
    %8 = vector.broadcast %7 : vector<1x64xf32> to vector<8x64xf32>
    %9 = arith.addf %6, %8 : vector<8x64xf32>
    %c0_10 = arith.constant 0 : index
    %c0_11 = arith.constant 0 : index
    %10 = vector.load %arg6[%c0_10, %c0_11] : memref<1x64xf32, #tpu.memory_space<vmem>>, vector<1x64xf32>
    %c0_12 = arith.constant 0 : index
    %c0_13 = arith.constant 0 : index
    %11 = vector.load %arg7[%c0_12, %c0_13] : memref<1x64xf32, #tpu.memory_space<vmem>>, vector<1x64xf32>
    %cst_14 = arith.constant dense<0.000000e+00> : vector<8xf32>
    %12 = vector.multi_reduction <add>, %9, %cst_14 [1] : vector<8x64xf32> to vector<8xf32>
    %13 = vector.shape_cast %12 : vector<8xf32> to vector<8x1xf32>
    %cst_15 = arith.constant 6.400000e+01 : f32
    %14 = vector.broadcast %cst_15 : f32 to vector<8x1xf32>
    %15 = arith.divf %13, %14 : vector<8x1xf32>
    %16 = vector.broadcast %15 : vector<8x1xf32> to vector<8x64xf32>
    %17 = arith.subf %9, %16 : vector<8x64xf32>
    %18 = arith.mulf %17, %17 : vector<8x64xf32>
    %cst_16 = arith.constant dense<0.000000e+00> : vector<8xf32>
    %19 = vector.multi_reduction <add>, %18, %cst_16 [1] : vector<8x64xf32> to vector<8xf32>
    %20 = vector.shape_cast %19 : vector<8xf32> to vector<8x1xf32>
    %cst_17 = arith.constant 6.400000e+01 : f32
    %21 = vector.broadcast %cst_17 : f32 to vector<8x1xf32>
    %22 = arith.divf %20, %21 : vector<8x1xf32>
    %cst_18 = arith.constant 9.99999974E-6 : f32
    %23 = vector.broadcast %cst_18 : f32 to vector<8x1xf32>
    %24 = arith.addf %22, %23 : vector<8x1xf32>
    %25 = math.rsqrt %24 : vector<8x1xf32>
    %26 = vector.broadcast %25 : vector<8x1xf32> to vector<8x64xf32>
    %27 = arith.mulf %17, %26 : vector<8x64xf32>
    %28 = vector.broadcast %10 : vector<1x64xf32> to vector<8x64xf32>
    %29 = arith.mulf %27, %28 : vector<8x64xf32>
    %30 = vector.broadcast %11 : vector<1x64xf32> to vector<8x64xf32>
    %31 = arith.addf %29, %30 : vector<8x64xf32>
    %cst_19 = arith.constant 0.000000e+00 : f32
    %32 = vector.broadcast %cst_19 : f32 to vector<8x64xf32>
    %33 = arith.maximumf %31, %32 : vector<8x64xf32>
    %c0_20 = arith.constant 0 : index
    %c0_21 = arith.constant 0 : index
    %34 = vector.load %arg8[%c0_20, %c0_21] : memref<64x32xf32, #tpu.memory_space<vmem>>, vector<64x32xf32>
    %cst_22 = arith.constant dense<0.000000e+00> : vector<8x32xf32>
    %35 = tpu.matmul %33, %34, %cst_22 {dimension_numbers = #tpu.dot_dimension_numbers<[1], [0], [0], [1], [0, 0, 1, 1], [], []>} : vector<8x64xf32>, vector<64x32xf32>, vector<8x32xf32> -> vector<8x32xf32>
    %c0_23 = arith.constant 0 : index
    %c0_24 = arith.constant 0 : index
    %36 = vector.load %arg9[%c0_23, %c0_24] : memref<1x32xf32, #tpu.memory_space<vmem>>, vector<1x32xf32>
    %37 = vector.broadcast %36 : vector<1x32xf32> to vector<8x32xf32>
    %38 = arith.addf %35, %37 : vector<8x32xf32>
    %c0_25 = arith.constant 0 : index
    %c0_26 = arith.constant 0 : index
    %39 = vector.load %arg10[%c0_25, %c0_26] : memref<1x32xf32, #tpu.memory_space<vmem>>, vector<1x32xf32>
    %c0_27 = arith.constant 0 : index
    %c0_28 = arith.constant 0 : index
    %40 = vector.load %arg11[%c0_27, %c0_28] : memref<1x32xf32, #tpu.memory_space<vmem>>, vector<1x32xf32>
    %cst_29 = arith.constant dense<0.000000e+00> : vector<8xf32>
    %41 = vector.multi_reduction <add>, %38, %cst_29 [1] : vector<8x32xf32> to vector<8xf32>
    %42 = vector.shape_cast %41 : vector<8xf32> to vector<8x1xf32>
    %cst_30 = arith.constant 3.200000e+01 : f32
    %43 = vector.broadcast %cst_30 : f32 to vector<8x1xf32>
    %44 = arith.divf %42, %43 : vector<8x1xf32>
    %45 = vector.broadcast %44 : vector<8x1xf32> to vector<8x32xf32>
    %46 = arith.subf %38, %45 : vector<8x32xf32>
    %47 = arith.mulf %46, %46 : vector<8x32xf32>
    %cst_31 = arith.constant dense<0.000000e+00> : vector<8xf32>
    %48 = vector.multi_reduction <add>, %47, %cst_31 [1] : vector<8x32xf32> to vector<8xf32>
    %49 = vector.shape_cast %48 : vector<8xf32> to vector<8x1xf32>
    %cst_32 = arith.constant 3.200000e+01 : f32
    %50 = vector.broadcast %cst_32 : f32 to vector<8x1xf32>
    %51 = arith.divf %49, %50 : vector<8x1xf32>
    %cst_33 = arith.constant 9.99999974E-6 : f32
    %52 = vector.broadcast %cst_33 : f32 to vector<8x1xf32>
    %53 = arith.addf %51, %52 : vector<8x1xf32>
    %54 = math.rsqrt %53 : vector<8x1xf32>
    %55 = vector.broadcast %54 : vector<8x1xf32> to vector<8x32xf32>
    %56 = arith.mulf %46, %55 : vector<8x32xf32>
    %57 = vector.broadcast %39 : vector<1x32xf32> to vector<8x32xf32>
    %58 = arith.mulf %56, %57 : vector<8x32xf32>
    %59 = vector.broadcast %40 : vector<1x32xf32> to vector<8x32xf32>
    %60 = arith.addf %58, %59 : vector<8x32xf32>
    %cst_34 = arith.constant 0.000000e+00 : f32
    %61 = vector.broadcast %cst_34 : f32 to vector<8x32xf32>
    %62 = arith.maximumf %60, %61 : vector<8x32xf32>
    %c0_35 = arith.constant 0 : index
    %c0_36 = arith.constant 0 : index
    %63 = vector.load %arg12[%c0_35, %c0_36] : memref<1x32xf32, #tpu.memory_space<vmem>>, vector<1x32xf32>
    %cst_37 = arith.constant dense<0.000000e+00> : vector<1x8xf32>
    %64 = tpu.matmul %63, %62, %cst_37 {dimension_numbers = #tpu.dot_dimension_numbers<[1], [1], [0], [0], [0, 0, 1, 0], [], []>} : vector<1x32xf32>, vector<8x32xf32>, vector<1x8xf32> -> vector<1x8xf32>
    %c0_38 = arith.constant 0 : index
    %c0_39 = arith.constant 0 : index
    %65 = vector.load %arg13[%c0_38, %c0_39] : memref<1x1xf32, #tpu.memory_space<vmem>>, vector<1x1xf32>
    %66 = vector.broadcast %65 : vector<1x1xf32> to vector<1x8xf32>
    %67 = arith.addf %64, %66 : vector<1x8xf32>
    %c0_40 = arith.constant 0 : index
    %c0_41 = arith.constant 0 : index
    %68 = vector.load %arg14[%c0_40, %c0_41] : memref<1x8xf32, #tpu.memory_space<vmem>>, vector<1x8xf32>
    tpu.vector_store %arg14[%c0_40, %c0_41], %67 {strides = array<i32>} : memref<1x8xf32, #tpu.memory_space<vmem>>, vector<1x8xf32>,
    return
  }
  func.func @transform_0(%arg0: i32) -> (i32, i32) {
    %c0_i32 = arith.constant 0 : i32
    %c0_i32_0 = arith.constant 0 : i32
    return %arg0, %c0_i32 : i32, i32
  }
  func.func @transform_1(%arg0: i32) -> (i32, i32) {
    %c0_i32 = arith.constant 0 : i32
    %c0_i32_0 = arith.constant 0 : i32
    return %arg0, %c0_i32 : i32, i32
  }
  func.func @transform_2(%arg0: i32) -> (i32, i32) {
    %c0_i32 = arith.constant 0 : i32
    %c0_i32_0 = arith.constant 0 : i32
    %c0_i32_1 = arith.constant 0 : i32
    return %c0_i32, %c0_i32_0 : i32, i32
  }
  func.func @transform_3(%arg0: i32) -> (i32, i32) {
    %c0_i32 = arith.constant 0 : i32
    %c0_i32_0 = arith.constant 0 : i32
    %c0_i32_1 = arith.constant 0 : i32
    return %c0_i32, %c0_i32_0 : i32, i32
  }
  func.func @transform_4(%arg0: i32) -> (i32, i32) {
    %c0_i32 = arith.constant 0 : i32
    %c0_i32_0 = arith.constant 0 : i32
    %c0_i32_1 = arith.constant 0 : i32
    return %c0_i32, %c0_i32_0 : i32, i32
  }
  func.func @transform_5(%arg0: i32) -> (i32, i32) {
    %c0_i32 = arith.constant 0 : i32
    %c0_i32_0 = arith.constant 0 : i32
    %c0_i32_1 = arith.constant 0 : i32
    return %c0_i32, %c0_i32_0 : i32, i32
  }
  func.func @transform_6(%arg0: i32) -> (i32, i32) {
    %c0_i32 = arith.constant 0 : i32
    %c0_i32_0 = arith.constant 0 : i32
    %c0_i32_1 = arith.constant 0 : i32
    return %c0_i32, %c0_i32_0 : i32, i32
  }
  func.func @transform_7(%arg0: i32) -> (i32, i32) {
    %c0_i32 = arith.constant 0 : i32
    %c0_i32_0 = arith.constant 0 : i32
    %c0_i32_1 = arith.constant 0 : i32
    return %c0_i32, %c0_i32_0 : i32, i32
  }
  func.func @transform_8(%arg0: i32) -> (i32, i32) {
    %c0_i32 = arith.constant 0 : i32
    %c0_i32_0 = arith.constant 0 : i32
    %c0_i32_1 = arith.constant 0 : i32
    return %c0_i32, %c0_i32_0 : i32, i32
  }
  func.func @transform_9(%arg0: i32) -> (i32, i32) {
    %c0_i32 = arith.constant 0 : i32
    %c0_i32_0 = arith.constant 0 : i32
    %c0_i32_1 = arith.constant 0 : i32
    return %c0_i32, %c0_i32_0 : i32, i32
  }
  func.func @transform_10(%arg0: i32) -> (i32, i32) {
    %c0_i32 = arith.constant 0 : i32
    %c0_i32_0 = arith.constant 0 : i32
    %c0_i32_1 = arith.constant 0 : i32
    return %c0_i32, %c0_i32_0 : i32, i32
  }
  func.func @transform_11(%arg0: i32) -> (i32, i32) {
    %c0_i32 = arith.constant 0 : i32
    %c0_i32_0 = arith.constant 0 : i32
    %c0_i32_1 = arith.constant 0 : i32
    return %c0_i32, %c0_i32_0 : i32, i32
  }
  func.func @transform_12(%arg0: i32) -> (i32, i32) {
    %c0_i32 = arith.constant 0 : i32
    %c0_i32_0 = arith.constant 0 : i32
    %c0_i32_1 = arith.constant 0 : i32
    return %c0_i32, %c0_i32_0 : i32, i32
  }
  func.func @transform_13(%arg0: i32) -> (i32, i32) {
    %c0_i32 = arith.constant 0 : i32
    %c0_i32_0 = arith.constant 0 : i32
    return %c0_i32, %arg0 : i32, i32
  }
}

</mosaic_0001>

<bundles_post_ra>
// kernel: tpu_custom_call.1
= control target key start
LH: loop header
LB: loop body
LE: loop exit
PB: predicated region body
PF: predicated region fallthrough
CT: control target
= control target key end

     0   :  { %s717_s0 = inlined_call_operand.vmem [shape: f32[8,12], index: 0, kind: input, shape index: {}]   ;;  %s718_s1 = inlined_call_operand.vmem [shape: f32[8,4], index: 1, kind: input, shape index: {}]   ;;  %s719_s2 = inlined_call_operand.vmem [shape: f32[12,64], index: 2, kind: input, shape index: {}]   ;;  %s720_s3 = inlined_call_operand.vmem [shape: f32[4,64], index: 3, kind: input, shape index: {}]   ;;  %s721_s4 = inlined_call_operand.vmem [shape: f32[1,64], index: 4, kind: input, shape index: {}]   ;;  %s722_s5 = inlined_call_operand.vmem [shape: f32[1,64], index: 5, kind: input, shape index: {}]   ;;  %s723_s6 = inlined_call_operand.vmem [shape: f32[1,64], index: 6, kind: input, shape index: {}]   ;;  %s724_s7 = inlined_call_operand.vmem [shape: f32[64,32], index: 7, kind: input, shape index: {}]   ;;  %s725_s8 = inlined_call_operand.vmem [shape: f32[1,32], index: 8, kind: input, shape index: {}]   ;;  %s726_s9 = inlined_call_operand.vmem [shape: f32[1,32], index: 9, kind: input, shape index: {}]   ;;  %s727_s10 = inlined_call_operand.vmem [shape: f32[1,32], index: 10, kind: input, shape index: {}]   ;;  %s728_s11 = inlined_call_operand.vmem [shape: f32[1,32], index: 11, kind: input, shape index: {}]   ;;  %s729_s12 = inlined_call_operand.<no memory space> [shape: f32[1,1], index: 12, kind: input, shape index: {}]   ;;  %s730_s13 = inlined_call_operand.hbm [shape: f32[1,8], index: 13, kind: output, shape index: {}]  }
   0x1   :  { %v18_v0 = vstv %s729_s12 }
   0x2   :  { %19 = vst [vmem:[#allocation2] sm:$0x1] %v18_v0 }
   0x3   :  { %v51_v1 = vld [vmem:[%s720_s3] sm:$0xf]  ;;  %vm56_vm0 = vcmask 1043456   ;;  %v566_v3 = vmov 0.0   ;;  %vm567_vm1 = vmmov 0   ;;  %vm52_vm2 = vcmask 31744  }
   0x4   :  { %v50_v2 = vld [vmem:[%s718_s1] sm:$0xff]  ;;  %499 = vmatprep.subr.mxu1 %v566_v3  ;;  %501 = vmatprep.mubr.msk.f32.mxu1 %vm567_vm1, %v566_v3  ;;  %v49_v4 = vld [vmem:[%s719_s2 + $0x8] sm:$0xf] }
   0x5   :  { %500 = vmatpush3.msk.msra.mxu1 %vm56_vm0, %v51_v1  ;;  %511 = vmatprep.subr.mxu0 %v566_v3 }
   0x6   :  { %20 = vsyncpa [#allocation4], 0  ;;  %502 = vmatmul.mubr.msk.f32.vlgmr.msra.gmra.mxu1 %vm52_vm2, %v50_v2  ;;  %504 = vmatprep.subr.mxu1 %v566_v3  ;;  %v48_v5 = vld [vmem:[%s719_s2] sm:$0xff]  ;;  %vm130_vm3 = vcmask 97280   ;;  %vm217_vm4 = vcmask 523264   ;;  %v254_v20 = vld [vmem:[%s724_s7 + $0x38] sm:$0xff]  ;;  %v374_v61 = vlaneseq }
   0x7   :  { %505 = vmatpush3.msk.msra.mxu1 %vm56_vm0, %v49_v4  ;;  %508 = vmatprep.mubr.msk.f32.mxu1 %vm567_vm1, %v566_v3  ;;  %v47_v6 = vld [vmem:[%s717_s0] sm:$0xff]  ;;  %v253_v21 = vld [vmem:[%s724_s7 + $0x30] sm:$0xff]  ;;  %v252_v22 = vld [vmem:[%s724_s7 + $0x28] sm:$0xff]  ;;  %vm337_vm5 = vcmask 261120   ;;  %v568_v49 = vmov 0   ;;  %vm454_vm6 = vcmask 57344  }
   0x8   :  { %506 = vmatprep.subr.mxu1 %v566_v3  ;;  %527 = vmatprep.mubr.msk.f32.mxu0 %vm567_vm1, %v566_v3  ;;  %v474_v10 = vld [vmem:[%s721_s4] ss:$0 sm:$0xff]  ;;  %v250_v24 = vld [vmem:[%s724_s7 + $0x18] sm:$0xff]  ;;  %v249_v25 = vld [vmem:[%s724_s7 + $0x10] sm:$0xff]  ;;  %v375_v62 = vshrl.u32 %v374_v61, 7 }
   0x9   :  { %507 = vmatpush3.msra.mxu1 %v48_v5  ;;  %512 = vmatpush3.msra.mxu0 %v254_v20  ;;  %v251_v23 = vld [vmem:[%s724_s7 + $0x20] sm:$0xff]  ;;  %v248_v26 = vld [vmem:[%s724_s7 + $0x8] sm:$0xff] }
   0xa   :  { %509 = vmatmul.mubr.msk.f32.vlgmr.msra.gmra.mxu1 %vm130_vm3, %v47_v6  ;;  %530 = vmatprep.subr.mxu1 %v566_v3  ;;  %v247_v27 = vld [vmem:[%s724_s7] sm:$0xff]  ;;  %v376_v63 = vsub.s32 0, %v375_v62 }
   0xb   :  { %532 = vmatprep.mubr.msk.f32.mxu1 %vm567_vm1, %v566_v3  ;;  %513 = vmatprep.subr.mxu0 %v566_v3  ;;  %v475_v32 = vld [vmem:[%s722_s5] ss:$0 sm:$0xff] }
   0xc   :  { %514 = vmatpush3.msra.mxu0 %v253_v21  ;;  %v476_v34 = vld [vmem:[%s723_s6] ss:$0 sm:$0xff]  ;;  %539 = vset.pattern.permute.xlu0 %v568_v49 }
   0xd   :  { %515 = vmatprep.subr.mxu0 %v566_v3  ;;  %v477_v38 = vld [vmem:[%s725_s8] ss:$0 sm:$0xff] }
   0xe   :  { %516 = vmatpush3.msra.mxu0 %v252_v22  ;;  %v368_v48 = vld [vmem:[#allocation2] sm:$0x1] }
   0xf   :  { %517 = vmatprep.subr.mxu0 %v566_v3  ;;  %v479_v54 = vld [vmem:[%s726_s9] ss:$0 sm:$0xff]  ;;  %s569_s9 = smov [#allocation3]  }
  0x10   :  { %518 = vmatpush3.msra.mxu0 %v251_v23  ;;  %v480_v56 = vld [vmem:[%s727_s10] ss:$0 sm:$0xff]  ;;  %s462_s18 = sshll.u32 %s569_s9, 4  ;;  %s463_s18 = int_to_ptr.vmem [resolvable:$true] %s462_s18 }
  0x11   :  { %519 = vmatprep.subr.mxu0 %v566_v3  ;;  %v367_v60 = vld [vmem:[%s728_s11] sm:$0x1]  ;;  %s544_s10 = scalar_lea.vmem %s463_s18, 16  ;;  %s548_s19 = scalar_lea.vmem %s463_s18, 32 }
  0x12   :  { %520 = vmatpush3.msra.mxu0 %v250_v24  ;;  %p545_p0 = scmp.ne.s32.totalorder %s463_s18, %s544_s10  ;;  %p549_p1 = scmp.lt.s32.totalorder %s463_s18, %s463_s18 }
  0x13   :  { %521 = vmatprep.subr.mxu0 %v566_v3  ;;  %p550_p2 = scmp.lt.s32.totalorder %s548_s19, %s544_s10 }
  0x14   :  { %522 = vmatpush3.msra.mxu0 %v249_v25 }
  0x15   :  { %523 = vmatprep.subr.mxu0 %v566_v3  ;;  %p551_p3 = por %p550_p2, %p549_p1 }
  0x16   :  { %524 = vmatpush3.msra.mxu0 %v248_v26 }
  0x17   :  { %525 = vmatprep.subr.mxu0 %v566_v3  ;;  %p552_p4 = pnand %p551_p3, %p545_p0 }
  0x18   :  { %526 = vmatpush3.msra.mxu0 %v247_v27 }
  0xc6   :  { %v126_v7 = vpop.f32.mrf.mxu1 }
  0xc8   :  { %v503_v8 = vpop.f32.mrf.mxu1 }
  0xca   :  { %v203_v9 = vpop.f32.mrf.mxu1 }
  0xcb   :  { %v204_v11 = vadd.f32 %v203_v9, %v126_v7 }
  0xcc   :  { %v510_v12 = vpop.f32.mrf.mxu1 }
  0xcd   :  { %v214_v13 = vadd.f32 %v474_v10, %v204_v11 }
  0xcf   :  { %v218_v14 = vsel %vm217_vm4, %v214_v13, 0.0 }
  0xd0   :  { %219 = vadd.xlane.f32.xlu0 %v218_v14 }
 0x159   :  { %v220_v15 = vpop.xlane.xlu0 %219 }
 0x15a   :  { %v222_v16 = vmul.f32 0.015625, %v220_v15 }
 0x15c   :  { %v223_v17 = vsub.f32 %v214_v13, %v222_v16 }
 0x15e   :  { %v224_v18 = vmul.f32 %v223_v17, %v223_v17 }
 0x160   :  { %v225_v19 = vsel %vm217_vm4, %v224_v18, 0.0 }
 0x161   :  { %226 = vadd.xlane.f32.xlu0 %v225_v19 }
 0x177   :  { %371 = vperm.xlu0 %539, %v368_v48  }
 0x1ea   :  { %v227_v28 = vpop.xlane.xlu0 %226 }
 0x1eb   :  { %v228_v29 = vmul.f32 0.015625, %v227_v28 }
 0x1ed   :  { %v229_v30 = vadd.f32 1e-05, %v228_v29 }
 0x1ef   :  { %540 = vrsqrt.f32 %v229_v30 }
 0x1f2   :  { %v372_v0 = vpop.permute.xlu0 %371 }
 0x1f3   :  { %v377_v1 = vrot.slane %v372_v0, %v376_v63 }
 0x1fc   :  { %v541_v31 = vpop.eup %540 }
 0x1fd   :  { %v231_v33 = vmul.f32 %v541_v31, %v223_v17 }
 0x1ff   :  { %v238_v35 = vmul.f32 %v475_v32, %v231_v33 }
 0x201   :  { %v245_v36 = vadd.f32 %v476_v34, %v238_v35 }
 0x203   :  { %v246_v37 = vmax.f32 %v245_v36, 0.0 }
 0x205   :  { %528 = vmatmul.mubr.msk.f32.vlgmr.msra.gmra.mxu0 %vm217_vm4, %v246_v37 }
 0x2c5   :  { %v331_v39 = vpop.f32.mrf.mxu0 }
 0x2c6   :  { %v332_v40 = vadd.f32 %v477_v38, %v331_v39 }
 0x2c7   :  { %v529_v41 = vpop.f32.mrf.mxu0 }
 0x2c8   :  { %v338_v42 = vsel %vm337_vm5, %v332_v40, 0.0 }
 0x2c9   :  { %339 = vadd.xlane.f32.xlu1 %v338_v42 }
 0x352   :  { %v340_v43 = vpop.xlane.xlu1 %339 }
 0x353   :  { %v342_v44 = vmul.f32 0.03125, %v340_v43 }
 0x355   :  { %v343_v45 = vsub.f32 %v332_v40, %v342_v44 }
 0x357   :  { %v344_v46 = vmul.f32 %v343_v45, %v343_v45 }
 0x359   :  { %v345_v47 = vsel %vm337_vm5, %v344_v46, 0.0 }
 0x35a   :  { %346 = vadd.xlane.f32.xlu1 %v345_v47 }
 0x3e3   :  { %v347_v50 = vpop.xlane.xlu1 %346 }
 0x3e4   :  { %v348_v51 = vmul.f32 0.03125, %v347_v50 }
 0x3e6   :  { %v349_v52 = vadd.f32 1e-05, %v348_v51 }
 0x3e8   :  { %542 = vrsqrt.f32 %v349_v52 }
 0x3f5   :  { %v543_v53 = vpop.eup %542 }
 0x3f6   :  { %v351_v55 = vmul.f32 %v543_v53, %v343_v45 }
 0x3f8   :  { %v358_v57 = vmul.f32 %v479_v54, %v351_v55 }
 0x3fa   :  { %v365_v58 = vadd.f32 %v480_v56, %v358_v57 }
 0x3fc   :  { %v366_v59 = vmax.f32 %v365_v58, 0.0 }
 0x3fe   :  { %531 = vmatpush3.xpose.msk.msra.mxu1 %vm337_vm5, %v366_v59 }
 0x401   :  { %533 = vmatmul.mubr.msk.f32.vlgmr.msra.gmra.mxu1 %vm337_vm5, %v367_v60 }
 0x4c1   :  { %v450_v2 = vpop.f32.mrf.mxu1 }
 0x4c2   :  { %v451_v3 = vadd.f32 %v450_v2, %v377_v1 }
 0x4c3   :  { %v534_v4 = vpop.f32.mrf.mxu1 }
 0x4c4   :  { %455 = vst.msk [vmem:[#allocation3] sm:$0x1] %vm454_vm6, %v451_v3 }
 0x4c5   :  { %555 = shalt.err (!%p552_p4)
}
 0x4c6   :  { %465 = dma.vmem_to_hbm [thread:$0]  %s463_s18, 16, %s730_s13, [#allocation4]  }
 0x4c7   :  { %564 = dma.done.wait [#allocation4], 16  }
 0x4c8   :  { %565 = vsyncadd [#allocation4], 4294967280 }
 0x4c9   :  { %469 = vsyncpa [#allocation4], 1 }

</bundles_post_ra>
